<compile_context>
chip_gen: v5e
topology: v5e:2x2
jax: 0.10.0
libtpu: 0.0.40
codegen_flags: <defaults>
</compile_context>

<pallas_src>
import jax
import jax.numpy as jnp
from jax.experimental import pallas as pl
from jax.experimental.pallas import tpu as pltpu


def _round_up(n, m):
    return ((n + m - 1) // m) * m


def _cdiv(a, b):
    return -(-a // b)


def _tpu_tuning():
    """(max batch row-tile, prefer an even grid count) for this TPU generation."""
    try:
        kind = jax.devices()[0].device_kind.lower()
    except Exception:
        kind = ""
    if "v5" in kind:              # v5e / v5p: 128x128 MXU tiles, single TensorCore
        return 128, False
    if "v7" in kind or "tpu7" in kind:   # v7x: 2x256 MXU, 2 TensorCores per chip
        return 256, True
    return 256, False             # v6e and default


def _pick_tile_b(B, max_tile, prefer_even_grid):
    """Batch row tile: multiple of 16 (bf16 sublane packing), minimal grid steps,
    even grid count on dual-TensorCore chips, minimal batch-padding rows."""
    if B <= 16:
        return B  # single block equal to the full (tiny) batch -> no padding
    b16 = _round_up(B, 16)
    cands = range(16, min(max_tile, b16) + 1, 16)

    def score(t):
        g = _cdiv(B, t)
        pad = g * t - B
        odd = (g % 2) if prefer_even_grid else 0
        return (g, odd, pad, -t)

    return min(cands, key=score)


def _mlp_kernel(x_ref,
                w1_ref, b1_ref,
                w2_ref, b2_ref,
                w3_ref, b3_ref,
                w4_ref, b4_ref,
                o_ref):
    """Fused 4-layer MLP on one (tile_b, in) row tile: (Linear+ReLU) x3 -> Linear.

    x is loaded f32 and cast to bf16 in-register; weights are bf16 MXU operands;
    accumulation, bias add and ReLU stay in f32.
    """
    h = x_ref[...].astype(jnp.bfloat16)
    h = jnp.dot(h, w1_ref[...], preferred_element_type=jnp.float32) + b1_ref[...]
    h = jnp.maximum(h, 0.0).astype(jnp.bfloat16)
    h = jnp.dot(h, w2_ref[...], preferred_element_type=jnp.float32) + b2_ref[...]
    h = jnp.maximum(h, 0.0).astype(jnp.bfloat16)
    h = jnp.dot(h, w3_ref[...], preferred_element_type=jnp.float32) + b3_ref[...]
    h = jnp.maximum(h, 0.0).astype(jnp.bfloat16)
    out = jnp.dot(h, w4_ref[...], preferred_element_type=jnp.float32) + b4_ref[...]
    o_ref[...] = out.astype(o_ref.dtype)


def prepare_params(params):
    """One-time prep: pad the hidden dim to a lane-dense multiple of 128 and cast
    weights to bf16 / biases to f32. Done OUTSIDE the per-step forward so the
    jitted call never re-pads or re-casts the (grid-invariant) parameters."""
    in_size, hid = params["w1"].shape
    out_size = params["w4"].shape[1]
    hid_p = _round_up(hid, 128)

    def pad_to(a, rows, cols, dtype):
        return jnp.pad(a, ((0, rows - a.shape[0]),
                           (0, cols - a.shape[1]))).astype(dtype)

    return {
        "w1": pad_to(params["w1"], in_size, hid_p, jnp.bfloat16),
        "b1": pad_to(params["b1"], 1, hid_p, jnp.float32),
        "w2": pad_to(params["w2"], hid_p, hid_p, jnp.bfloat16),
        "b2": pad_to(params["b2"], 1, hid_p, jnp.float32),
        "w3": pad_to(params["w3"], hid_p, hid_p, jnp.bfloat16),
        "b3": pad_to(params["b3"], 1, hid_p, jnp.float32),
        "w4": pad_to(params["w4"], hid_p, out_size, jnp.bfloat16),
        "b4": params["b4"].astype(jnp.float32),
    }


@jax.jit
def deep_q_net_forward(x, prepped):
    """Forward pass of DeepQNet.

    x:       (B, inputSize) float32
    prepped: output of prepare_params() (padded bf16 weights, f32 biases)
    """
    B, in_size = x.shape
    hid_p = prepped["w1"].shape[1]
    out_size = prepped["w4"].shape[1]

    max_tile, even_grid = _tpu_tuning()
    tile_b = _pick_tile_b(B, max_tile, even_grid)
    grid_b = _cdiv(B, tile_b)
    b_p = grid_b * tile_b

    x_in = x if b_p == B else jnp.pad(x, ((0, b_p - B), (0, 0)))

    # Advisory cost for XLA's scheduler around the custom call.
    w_elems = in_size * hid_p + 2 * hid_p * hid_p + hid_p * out_size
    cost = pl.CostEstimate(
        flops=2 * b_p * w_elems,
        transcendentals=0,
        bytes_accessed=(b_p * in_size * 4            # x (f32)
                        + 2 * w_elems                # bf16 weights
                        + 4 * (3 * hid_p + out_size)  # f32 biases
                        + b_p * out_size * 4))        # f32 output

    def resident(a):
        # Grid-invariant block (constant index_map): stays in VMEM across steps,
        # no re-DMA per grid iteration.
        return pl.BlockSpec(a.shape, lambda i: (0, 0))

    in_specs = [pl.BlockSpec((tile_b, in_size), lambda i: (i, 0))]
    args = [x_in]
    for k in range(1, 5):
        wk, bk = prepped[f"w{k}"], prepped[f"b{k}"]
        in_specs += [resident(wk), resident(bk)]
        args += [wk, bk]

    y = pl.pallas_call(
        _mlp_kernel,
        out_shape=jax.ShapeDtypeStruct((b_p, out_size), jnp.float32),
        grid=(grid_b,),
        in_specs=in_specs,
        out_specs=pl.BlockSpec((tile_b, out_size), lambda i: (i, 0)),
        compiler_params=pltpu.CompilerParams(
            dimension_semantics=("parallel",),
            # Headroom for the double-buffered resident weights at larger hidden
            # sizes (esp. v5e's 16 MiB default scoped VMEM).
            vmem_limit_bytes=32 << 20),
        cost_estimate=cost,
    )(*args)

    return y if b_p == B else y[:B]


def init_params(key, input_size, hidden_size, output_size):
    """Deterministic init mirroring nn.Linear default (uniform +/- 1/sqrt(fan_in)).

    Weights stored as (in_features, out_features); biases as (1, out_features).
    """
    dims = [(input_size, hidden_size),
            (hidden_size, hidden_size),
            (hidden_size, hidden_size),
            (hidden_size, output_size)]
    params = {}
    for i, (fan_in, fan_out) in enumerate(dims, start=1):
        key, kw, kb = jax.random.split(key, 3)
        bound = 1.0 / (fan_in ** 0.5)
        params[f"w{i}"] = jax.random.uniform(
            kw, (fan_in, fan_out), jnp.float32, -bound, bound)
        params[f"b{i}"] = jax.random.uniform(
            kb, (1, fan_out), jnp.float32, -bound, bound)
    return params


def _reference_forward(x, params):
    """Plain-JAX reference with the same numerics (bf16 operands, f32 accum)."""
    h = x.astype(jnp.bfloat16)
    for i in (1, 2, 3):
        h = jnp.dot(h, params[f"w{i}"].astype(jnp.bfloat16),
                    preferred_element_type=jnp.float32) + params[f"b{i}"]
        h = jnp.maximum(h, 0.0).astype(jnp.bfloat16)
    return jnp.dot(h, params["w4"].astype(jnp.bfloat16),
                   preferred_element_type=jnp.float32) + params["b4"]


if __name__ == "__main__":
    key = jax.random.PRNGKey(0)

    # (1) small DQN-scale shapes implied by the module: B=8, in=16, hidden=32, out=4.
    B, IN, HID, OUT = 8, 16, 32, 4
    key, kx = jax.random.split(key)
    x = jax.random.normal(kx, (B, IN), dtype=jnp.float32)
    params = init_params(key, IN, HID, OUT)
    prepped = prepare_params(params)

    y = jax.block_until_ready(deep_q_net_forward(x, prepped))
    y_ref = _reference_forward(x, params)
    assert y.shape == (B, OUT)
    assert jnp.allclose(y, y_ref, atol=1e-2, rtol=1e-2), \
        float(jnp.max(jnp.abs(y - y_ref)))

    # (2) a batch that actually exercises the grid / pipelining (multiple row tiles).
    B2, IN2, HID2, OUT2 = 640, 16, 128, 4
    key, kx2 = jax.random.split(key)
    x2 = jax.random.normal(kx2, (B2, IN2), dtype=jnp.float32)
    params2 = init_params(key, IN2, HID2, OUT2)
    prepped2 = prepare_params(params2)

    y2 = jax.block_until_ready(deep_q_net_forward(x2, prepped2))
    y2_ref = _reference_forward(x2, params2)
    assert y2.shape == (B2, OUT2)
    assert jnp.allclose(y2, y2_ref, atol=1e-2, rtol=1e-2), \
        float(jnp.max(jnp.abs(y2 - y2_ref)))

    print("KERNEL_OK")
</pallas_src>

<mosaic_0001>
module attributes {stable_mosaic.version = 11 : i64} {
  func.func @_mlp_kernel(%arg0: i32, %arg1: memref<8x16xf32, #tpu.memory_space<vmem>>, %arg2: memref<16x128xbf16, #tpu.memory_space<vmem>>, %arg3: memref<1x128xf32, #tpu.memory_space<vmem>>, %arg4: memref<128x128xbf16, #tpu.memory_space<vmem>>, %arg5: memref<1x128xf32, #tpu.memory_space<vmem>>, %arg6: memref<128x128xbf16, #tpu.memory_space<vmem>>, %arg7: memref<1x128xf32, #tpu.memory_space<vmem>>, %arg8: memref<128x4xbf16, #tpu.memory_space<vmem>>, %arg9: memref<1x4xf32, #tpu.memory_space<vmem>>, %arg10: memref<8x4xf32, #tpu.memory_space<vmem>>) attributes {dimension_semantics = [#tpu.dimension_semantics<parallel>], iteration_bounds = array<i64: 1>, scalar_prefetch = 0 : i64, scratch_operands = 0 : i64, tpu.core_type = #tpu.core_type<tc>, window_params = [{transform_indices = @transform_0, window_bounds = array<i64: 8, 16>}, {pipeline_mode = #tpu.pipeline_mode<synchronous>, transform_indices = @transform_1, window_bounds = array<i64: 16, 128>}, {pipeline_mode = #tpu.pipeline_mode<synchronous>, transform_indices = @transform_2, window_bounds = array<i64: 1, 128>}, {pipeline_mode = #tpu.pipeline_mode<synchronous>, transform_indices = @transform_3, window_bounds = array<i64: 128, 128>}, {pipeline_mode = #tpu.pipeline_mode<synchronous>, transform_indices = @transform_4, window_bounds = array<i64: 1, 128>}, {pipeline_mode = #tpu.pipeline_mode<synchronous>, transform_indices = @transform_5, window_bounds = array<i64: 128, 128>}, {pipeline_mode = #tpu.pipeline_mode<synchronous>, transform_indices = @transform_6, window_bounds = array<i64: 1, 128>}, {pipeline_mode = #tpu.pipeline_mode<synchronous>, transform_indices = @transform_7, window_bounds = array<i64: 128, 4>}, {pipeline_mode = #tpu.pipeline_mode<synchronous>, transform_indices = @transform_8, window_bounds = array<i64: 1, 4>}, {transform_indices = @transform_9, window_bounds = array<i64: 8, 4>}]} {
    %c0 = arith.constant 0 : index
    %c0_0 = arith.constant 0 : index
    %0 = vector.load %arg1[%c0, %c0_0] : memref<8x16xf32, #tpu.memory_space<vmem>>, vector<8x16xf32>
    %1 = arith.truncf %0 : vector<8x16xf32> to vector<8x16xbf16>
    %c0_1 = arith.constant 0 : index
    %c0_2 = arith.constant 0 : index
    %2 = vector.load %arg2[%c0_1, %c0_2] : memref<16x128xbf16, #tpu.memory_space<vmem>>, vector<16x128xbf16>
    %cst = arith.constant dense<0.000000e+00> : vector<8x128xf32>
    %3 = tpu.matmul %1, %2, %cst {dimension_numbers = #tpu.dot_dimension_numbers<[1], [0], [0], [1], [0, 0, 1, 1], [], []>} : vector<8x16xbf16>, vector<16x128xbf16>, vector<8x128xf32> -> vector<8x128xf32>
    %c0_3 = arith.constant 0 : index
    %c0_4 = arith.constant 0 : index
    %4 = vector.load %arg3[%c0_3, %c0_4] : memref<1x128xf32, #tpu.memory_space<vmem>>, vector<1x128xf32>
    %5 = vector.broadcast %4 : vector<1x128xf32> to vector<8x128xf32>
    %6 = arith.addf %3, %5 : vector<8x128xf32>
    %cst_5 = arith.constant 0.000000e+00 : f32
    %7 = vector.broadcast %cst_5 : f32 to vector<8x128xf32>
    %8 = arith.maximumf %6, %7 : vector<8x128xf32>
    %9 = arith.truncf %8 : vector<8x128xf32> to vector<8x128xbf16>
    %c0_6 = arith.constant 0 : index
    %c0_7 = arith.constant 0 : index
    %10 = vector.load %arg4[%c0_6, %c0_7] : memref<128x128xbf16, #tpu.memory_space<vmem>>, vector<128x128xbf16>
    %cst_8 = arith.constant dense<0.000000e+00> : vector<8x128xf32>
    %11 = tpu.matmul %9, %10, %cst_8 {dimension_numbers = #tpu.dot_dimension_numbers<[1], [0], [0], [1], [0, 0, 1, 1], [], []>} : vector<8x128xbf16>, vector<128x128xbf16>, vector<8x128xf32> -> vector<8x128xf32>
    %c0_9 = arith.constant 0 : index
    %c0_10 = arith.constant 0 : index
    %12 = vector.load %arg5[%c0_9, %c0_10] : memref<1x128xf32, #tpu.memory_space<vmem>>, vector<1x128xf32>
    %13 = vector.broadcast %12 : vector<1x128xf32> to vector<8x128xf32>
    %14 = arith.addf %11, %13 : vector<8x128xf32>
    %cst_11 = arith.constant 0.000000e+00 : f32
    %15 = vector.broadcast %cst_11 : f32 to vector<8x128xf32>
    %16 = arith.maximumf %14, %15 : vector<8x128xf32>
    %17 = arith.truncf %16 : vector<8x128xf32> to vector<8x128xbf16>
    %c0_12 = arith.constant 0 : index
    %c0_13 = arith.constant 0 : index
    %18 = vector.load %arg6[%c0_12, %c0_13] : memref<128x128xbf16, #tpu.memory_space<vmem>>, vector<128x128xbf16>
    %cst_14 = arith.constant dense<0.000000e+00> : vector<8x128xf32>
    %19 = tpu.matmul %17, %18, %cst_14 {dimension_numbers = #tpu.dot_dimension_numbers<[1], [0], [0], [1], [0, 0, 1, 1], [], []>} : vector<8x128xbf16>, vector<128x128xbf16>, vector<8x128xf32> -> vector<8x128xf32>
    %c0_15 = arith.constant 0 : index
    %c0_16 = arith.constant 0 : index
    %20 = vector.load %arg7[%c0_15, %c0_16] : memref<1x128xf32, #tpu.memory_space<vmem>>, vector<1x128xf32>
    %21 = vector.broadcast %20 : vector<1x128xf32> to vector<8x128xf32>
    %22 = arith.addf %19, %21 : vector<8x128xf32>
    %cst_17 = arith.constant 0.000000e+00 : f32
    %23 = vector.broadcast %cst_17 : f32 to vector<8x128xf32>
    %24 = arith.maximumf %22, %23 : vector<8x128xf32>
    %25 = arith.truncf %24 : vector<8x128xf32> to vector<8x128xbf16>
    %c0_18 = arith.constant 0 : index
    %c0_19 = arith.constant 0 : index
    %26 = vector.load %arg8[%c0_18, %c0_19] : memref<128x4xbf16, #tpu.memory_space<vmem>>, vector<128x4xbf16>
    %cst_20 = arith.constant dense<0.000000e+00> : vector<8x4xf32>
    %27 = tpu.matmul %25, %26, %cst_20 {dimension_numbers = #tpu.dot_dimension_numbers<[1], [0], [0], [1], [0, 0, 1, 1], [], []>} : vector<8x128xbf16>, vector<128x4xbf16>, vector<8x4xf32> -> vector<8x4xf32>
    %c0_21 = arith.constant 0 : index
    %c0_22 = arith.constant 0 : index
    %28 = vector.load %arg9[%c0_21, %c0_22] : memref<1x4xf32, #tpu.memory_space<vmem>>, vector<1x4xf32>
    %29 = vector.broadcast %28 : vector<1x4xf32> to vector<8x4xf32>
    %30 = arith.addf %27, %29 : vector<8x4xf32>
    %c0_23 = arith.constant 0 : index
    %c0_24 = arith.constant 0 : index
    %31 = vector.load %arg10[%c0_23, %c0_24] : memref<8x4xf32, #tpu.memory_space<vmem>>, vector<8x4xf32>
    tpu.vector_store %arg10[%c0_23, %c0_24], %30 {strides = array<i32>} : memref<8x4xf32, #tpu.memory_space<vmem>>, vector<8x4xf32>,
    return
  }
  func.func @transform_0(%arg0: i32) -> (i32, i32) {
    %c0_i32 = arith.constant 0 : i32
    %c0_i32_0 = arith.constant 0 : i32
    return %arg0, %c0_i32 : i32, i32
  }
  func.func @transform_1(%arg0: i32) -> (i32, i32) {
    %c0_i32 = arith.constant 0 : i32
    %c0_i32_0 = arith.constant 0 : i32
    %c0_i32_1 = arith.constant 0 : i32
    return %c0_i32, %c0_i32_0 : i32, i32
  }
  func.func @transform_2(%arg0: i32) -> (i32, i32) {
    %c0_i32 = arith.constant 0 : i32
    %c0_i32_0 = arith.constant 0 : i32
    %c0_i32_1 = arith.constant 0 : i32
    return %c0_i32, %c0_i32_0 : i32, i32
  }
  func.func @transform_3(%arg0: i32) -> (i32, i32) {
    %c0_i32 = arith.constant 0 : i32
    %c0_i32_0 = arith.constant 0 : i32
    %c0_i32_1 = arith.constant 0 : i32
    return %c0_i32, %c0_i32_0 : i32, i32
  }
  func.func @transform_4(%arg0: i32) -> (i32, i32) {
    %c0_i32 = arith.constant 0 : i32
    %c0_i32_0 = arith.constant 0 : i32
    %c0_i32_1 = arith.constant 0 : i32
    return %c0_i32, %c0_i32_0 : i32, i32
  }
  func.func @transform_5(%arg0: i32) -> (i32, i32) {
    %c0_i32 = arith.constant 0 : i32
    %c0_i32_0 = arith.constant 0 : i32
    %c0_i32_1 = arith.constant 0 : i32
    return %c0_i32, %c0_i32_0 : i32, i32
  }
  func.func @transform_6(%arg0: i32) -> (i32, i32) {
    %c0_i32 = arith.constant 0 : i32
    %c0_i32_0 = arith.constant 0 : i32
    %c0_i32_1 = arith.constant 0 : i32
    return %c0_i32, %c0_i32_0 : i32, i32
  }
  func.func @transform_7(%arg0: i32) -> (i32, i32) {
    %c0_i32 = arith.constant 0 : i32
    %c0_i32_0 = arith.constant 0 : i32
    %c0_i32_1 = arith.constant 0 : i32
    return %c0_i32, %c0_i32_0 : i32, i32
  }
  func.func @transform_8(%arg0: i32) -> (i32, i32) {
    %c0_i32 = arith.constant 0 : i32
    %c0_i32_0 = arith.constant 0 : i32
    %c0_i32_1 = arith.constant 0 : i32
    return %c0_i32, %c0_i32_0 : i32, i32
  }
  func.func @transform_9(%arg0: i32) -> (i32, i32) {
    %c0_i32 = arith.constant 0 : i32
    %c0_i32_0 = arith.constant 0 : i32
    return %arg0, %c0_i32 : i32, i32
  }
}

</mosaic_0001>

<bundles_post_ra>
// kernel: deep_q_net_forward.1
= control target key start
LH: loop header
LB: loop body
LE: loop exit
PB: predicated region body
PF: predicated region fallthrough
CT: control target
= control target key end

     0   :  { %14 = vsyncpa [#allocation3], 0  ;;  %s704_s0 = inlined_call_operand.hbm [shape: f32[8,16], index: 0, kind: input, shape index: {}]   ;;  %s705_s1 = inlined_call_operand.hbm [shape: bf16[16,128], index: 1, kind: input, shape index: {}]   ;;  %s706_s2 = inlined_call_operand.vmem [shape: f32[1,128], index: 2, kind: input, shape index: {}]   ;;  %s707_s3 = inlined_call_operand.vmem [shape: bf16[128,128], index: 3, kind: input, shape index: {}]   ;;  %s708_s4 = inlined_call_operand.vmem [shape: f32[1,128], index: 4, kind: input, shape index: {}]   ;;  %s709_s5 = inlined_call_operand.hbm [shape: bf16[128,128], index: 5, kind: input, shape index: {}]   ;;  %s710_s6 = inlined_call_operand.vmem [shape: f32[1,128], index: 6, kind: input, shape index: {}]   ;;  %s711_s7 = inlined_call_operand.vmem [shape: bf16[128,4], index: 7, kind: input, shape index: {}]   ;;  %s712_s8 = inlined_call_operand.vmem [shape: f32[1,4], index: 8, kind: input, shape index: {}]   ;;  %s713_s9 = inlined_call_operand.vmem [shape: f32[8,4], index: 9, kind: output, shape index: {}]  }
   0x1   :  { %15 = vsyncpa [#allocation5], 0  ;;  %s31_s11 = sshll.u32 %s705_s1, 4  ;;  %s577_s12 = smov [#allocation4]   ;;  %s32_s11 = int_to_ptr.hbm [resolvable:$true] %s31_s11 }
   0x2   :  { %s33_s13 = sshll.u32 %s577_s12, 4  ;;  %s21_s16 = sshll.u32 %s704_s0, 4  ;;  %s34_s13 = int_to_ptr.vmem [resolvable:$true] %s33_s13  ;;  %s22_s16 = int_to_ptr.hbm [resolvable:$true] %s21_s16 }
   0x3   :  { %s578_s17 = smov 64   ;;  %s579_s18 = smov 4  }
   0x4   :  { %39 = dma.hbm_to_vmem [thread:$0]  %s32_s11, 128, %s34_s13, [#allocation5], %s578_s17, %s578_s17, %s579_s18  }
   0x5   :  { %s580_s19 = smov [#allocation2]   ;;  %s50_s23 = sshll.u32 %s709_s5, 4  ;;  %s51_s23 = int_to_ptr.hbm [resolvable:$true] %s50_s23 }
   0x6   :  { %s23_s20 = sshll.u32 %s580_s19, 4  ;;  %s581_s1 = smov [#allocation6]   ;;  %s24_s20 = int_to_ptr.vmem [resolvable:$true] %s23_s20 }
   0x7   :  { %26 = dma.hbm_to_vmem [thread:$0]  %s22_s16, 128, %s24_s20, [#allocation3]  }
   0x8   :  { %s52_s24 = sshll.u32 %s581_s1, 4  ;;  %s53_s24 = int_to_ptr.vmem [resolvable:$true] %s52_s24 }
   0x9   :  { %58 = dma.hbm_to_vmem [thread:$0]  %s51_s23, 1024, %s53_s24, [#allocation5], %s578_s17, %s578_s17, %s579_s18  }
   0xa   :  { %573 = dma.done.wait [#allocation3], 128  }
   0xb   :  { %574 = vsyncadd [#allocation3], 4294967168 }
   0xc   :  { %575 = dma.done.wait [#allocation5], 1152  }
   0xd   :  { %576 = vsyncadd [#allocation5], 4294966144  ;;  %v467_v0 = vld [vmem:[#allocation4] sm:$0xff]  ;;  %v78_v1 = vld [vmem:[#allocation2] sm:$0xff]  ;;  %vm92_vm0 = vcmask 130048   ;;  %vm358_vm1 = vcmask 31744  }
   0xe   :  { %v475_v2 = vld [vmem:[%s707_s3 + $0x38] sm:$0xff]  ;;  %v79_v3 = vpack.c.bf16 %v78_v1, %v78_v1  ;;  %103 = vmatpush.bf16.msra.mxu0 %v467_v0  ;;  %v474_v4 = vld [vmem:[%s707_s3 + $0x30] sm:$0xff]  ;;  %v473_v5 = vld [vmem:[%s707_s3 + $0x28] sm:$0xff] }
   0xf   :  { %179 = vmatpush.bf16.msra.mxu1 %v475_v2  ;;  %v472_v6 = vld [vmem:[%s707_s3 + $0x20] sm:$0xff]  ;;  %v471_v7 = vld [vmem:[%s707_s3 + $0x18] sm:$0xff]  ;;  %v470_v8 = vld [vmem:[%s707_s3 + $0x10] sm:$0xff] }
  0x10   :  { %v469_v9 = vld [vmem:[%s707_s3 + $0x8] sm:$0xff]  ;;  %v468_v10 = vld [vmem:[%s707_s3] sm:$0xff]  ;;  %v481_v13 = vld [vmem:[#allocation6 + $0x28] sm:$0xff] }
  0x11   :  { %370 = vmatmul.msk.bf16.vlgmr.msra.gmra.mxu0 %vm92_vm0, %v79_v3  ;;  %v483_v11 = vld [vmem:[#allocation6 + $0x38] sm:$0xff]  ;;  %v482_v12 = vld [vmem:[#allocation6 + $0x30] sm:$0xff]  ;;  %v480_v14 = vld [vmem:[#allocation6 + $0x20] sm:$0xff] }
  0x12   :  { %262 = vmatpush.bf16.msra.mxu2 %v483_v11  ;;  %v479_v15 = vld [vmem:[#allocation6 + $0x18] sm:$0xff]  ;;  %v478_v16 = vld [vmem:[#allocation6 + $0x10] sm:$0xff]  ;;  %v477_v23 = vld [vmem:[#allocation6 + $0x8] sm:$0xff] }
  0x13   :  { %180 = vmatpush.bf16.msra.mxu1 %v474_v4  ;;  %v497_v17 = vld [vmem:[%s706_s2] ss:$0 sm:$0xff]  ;;  %v476_v24 = vld [vmem:[#allocation6] sm:$0xff]  ;;  %v491_v25 = vld [vmem:[%s711_s7 + $0x38] sm:$0xff] }
  0x14   :  { %345 = vmatpush.bf16.msra.mxu3 %v491_v25  ;;  %v490_v26 = vld [vmem:[%s711_s7 + $0x30] sm:$0xff]  ;;  %v489_v27 = vld [vmem:[%s711_s7 + $0x28] sm:$0xff]  ;;  %v488_v28 = vld [vmem:[%s711_s7 + $0x20] sm:$0xff] }
  0x15   :  { %v487_v29 = vld [vmem:[%s711_s7 + $0x18] sm:$0xff]  ;;  %v486_v30 = vld [vmem:[%s711_s7 + $0x10] sm:$0xff]  ;;  %v498_v31 = vld [vmem:[%s708_s4] ss:$0 sm:$0xff] }
  0x16   :  { %263 = vmatpush.bf16.msra.mxu2 %v482_v12  ;;  %v485_v37 = vld [vmem:[%s711_s7 + $0x8] sm:$0xff]  ;;  %v484_v38 = vld [vmem:[%s711_s7] sm:$0xff] }
  0x17   :  { %181 = vmatpush.bf16.msra.mxu1 %v473_v5  ;;  %v499_v39 = vld [vmem:[%s710_s6] ss:$0 sm:$0xff] }
  0x18   :  { %346 = vmatpush.bf16.msra.mxu3 %v490_v26  ;;  %v500_v45 = vld [vmem:[%s712_s8] ss:$0 sm:$0xff] }
  0x1a   :  { %264 = vmatpush.bf16.msra.mxu2 %v481_v13 }
  0x1b   :  { %182 = vmatpush.bf16.msra.mxu1 %v472_v6 }
  0x1c   :  { %347 = vmatpush.bf16.msra.mxu3 %v489_v27 }
  0x1e   :  { %265 = vmatpush.bf16.msra.mxu2 %v480_v14 }
  0x1f   :  { %183 = vmatpush.bf16.msra.mxu1 %v471_v7 }
  0x20   :  { %348 = vmatpush.bf16.msra.mxu3 %v488_v28 }
  0x22   :  { %266 = vmatpush.bf16.msra.mxu2 %v479_v15 }
  0x23   :  { %184 = vmatpush.bf16.msra.mxu1 %v470_v8 }
  0x24   :  { %349 = vmatpush.bf16.msra.mxu3 %v487_v29 }
  0x26   :  { %267 = vmatpush.bf16.msra.mxu2 %v478_v16 }
  0x27   :  { %185 = vmatpush.bf16.msra.mxu1 %v469_v9 }
  0x28   :  { %350 = vmatpush.bf16.msra.mxu3 %v486_v30 }
  0x2a   :  { %268 = vmatpush.bf16.msra.mxu2 %v477_v23 }
  0x2b   :  { %186 = vmatpush.bf16.msra.mxu1 %v468_v10 }
  0x2c   :  { %351 = vmatpush.bf16.msra.mxu3 %v485_v37 }
  0x2e   :  { %269 = vmatpush.bf16.msra.mxu2 %v476_v24 }
  0x30   :  { %352 = vmatpush.bf16.msra.mxu3 %v484_v38 }
  0x8e   :  { %v105_v18 = vpop.f32.mrf.mxu0 }
  0x8f   :  { %v106_v19 = vadd.f32 %v497_v17, %v105_v18 }
  0x91   :  { %v109_v20 = vmax.f32 %v106_v19, 0.0 }
  0x93   :  { %v110_v21 = vpack.c.bf16 %v109_v20, %v109_v20 }
  0x95   :  { %187 = vmatmul.bf16.vlgmr.msra.gmra.mxu1 %v110_v21 }
  0x96   :  { %v107_v22 = vpop.f32.mrf.mxu0 }
 0x112   :  { %v188_v32 = vpop.f32.mrf.mxu1 }
 0x113   :  { %v189_v33 = vadd.f32 %v498_v31, %v188_v32 }
 0x115   :  { %v192_v34 = vmax.f32 %v189_v33, 0.0 }
 0x117   :  { %v193_v35 = vpack.c.bf16 %v192_v34, %v192_v34 }
 0x119   :  { %270 = vmatmul.bf16.vlgmr.msra.gmra.mxu2 %v193_v35 }
 0x11a   :  { %v190_v36 = vpop.f32.mrf.mxu1 }
 0x19c   :  { %v271_v40 = vpop.f32.mrf.mxu2 }
 0x19d   :  { %v272_v41 = vadd.f32 %v499_v39, %v271_v40 }
 0x19f   :  { %v275_v42 = vmax.f32 %v272_v41, 0.0 }
 0x1a1   :  { %v276_v43 = vpack.c.bf16 %v275_v42, %v275_v42 }
 0x1a3   :  { %353 = vmatmul.bf16.vlgmr.msra.gmra.mxu3 %v276_v43 }
 0x1a4   :  { %v273_v44 = vpop.f32.mrf.mxu2 }
 0x226   :  { %v354_v46 = vpop.f32.mrf.mxu3 }
 0x227   :  { %v355_v47 = vadd.f32 %v500_v45, %v354_v46 }
 0x229   :  { %359 = vst.msk [vmem:[%s713_s9] sm:$0xff] %vm358_vm1, %v355_v47 }
 0x22e   :  { %v356_v48 = vpop.f32.mrf.mxu3 }
 0x22f   :  { %364 = vsyncpa [#allocation3], 1 }
 0x230   :  { %365 = vsyncpa [#allocation5], 1 }

</bundles_post_ra>
